<compile_context>
chip_gen: v7x
topology: tpu7x:2x2x1
jax: 0.10.0
libtpu: 0.0.40
codegen_flags: <defaults>
</compile_context>

<pallas_src>
import functools

import jax
import jax.numpy as jnp
from jax.experimental import pallas as pl
from jax.experimental.pallas import tpu as pltpu

H_PAD = 128          # lane width (hidden dim)
C_PAD = 128          # lane width (class dim)
NEG_BIG = -1e30      # bias for padded class lanes (finite; safe because logits stay f32)
DEFAULT_TILE_B = 256 # rows per grid step: fills the 256-wide MXU on v6e/v7x


def _round_up(n, m):
    return -(-n // m) * m


def _fwd_kernel(x_ref, w1_ref, b1_ref, w2_ref, b2_ref, logits_ref):
    """Inference-only tile: Linear -> ReLU -> Linear.  Weights resident across steps."""
    x = x_ref[...].astype(w1_ref.dtype)                                # cast on VPU (free-ish)
    h = jnp.dot(x, w1_ref[...], preferred_element_type=jnp.float32)    # (T, H_PAD) f32
    h = jnp.maximum(h + b1_ref[...], 0.0)
    logits = jnp.dot(h.astype(w2_ref.dtype), w2_ref[...],
                     preferred_element_type=jnp.float32) + b2_ref[...]  # (T, C_PAD) f32
    logits_ref[...] = logits.astype(logits_ref.dtype)


def _fwd_loss_kernel(x_ref, w1_ref, b1_ref, w2_ref, b2_ref, labels_ref,
                     logits_ref, loss_ref, acc_ref, *, true_batch):
    """Fused forward + CrossEntropyLoss (mean over the true batch), tiled over B.

    x:       (TILE_B, D) tile            (padded rows, if any, are masked below)
    w1, b1:  (D, H_PAD), (1, H_PAD)       resident in VMEM (constant index_map)
    w2, b2:  (H_PAD, C_PAD), (1, C_PAD)   padded class lanes carry NEG_BIG bias
    labels:  (TILE_B, 1) int32 tile
    out:     logits tile (TILE_B, C_PAD) f32; loss (1, 1) f32 in SMEM (written once)
    scratch: acc (1, 1) f32 in SMEM — running sum of per-row NLL across tiles
    """
    i = pl.program_id(0)
    tile_b = logits_ref.shape[0]

    @pl.when(i == 0)
    def _():
        acc_ref[0, 0] = 0.0

    x = x_ref[...].astype(w1_ref.dtype)
    h = jnp.dot(x, w1_ref[...], preferred_element_type=jnp.float32)
    h = jnp.maximum(h + b1_ref[...], 0.0)
    logits = jnp.dot(h.astype(w2_ref.dtype), w2_ref[...],
                     preferred_element_type=jnp.float32) + b2_ref[...]
    logits_ref[...] = logits.astype(logits_ref.dtype)

    # Numerically stable log-softmax.  Padded class lanes hold NEG_BIG so they
    # contribute exp(...) == 0 and never win the max (exact in f32).
    m = jnp.max(logits, axis=-1, keepdims=True)                         # (T, 1)
    lse = m + jnp.log(jnp.sum(jnp.exp(logits - m), axis=-1, keepdims=True))

    # picked[r] = logits[r, label[r]] via an iota compare (no one-hot input).
    class_ids = jax.lax.broadcasted_iota(jnp.int32, logits.shape, 1)    # (T, C_PAD)
    picked = jnp.sum(jnp.where(class_ids == labels_ref[...], logits, 0.0),
                     axis=-1, keepdims=True)                            # (T, 1)

    # Mask padded batch rows using the *global* row index for this tile.
    row_ids = i * tile_b + jax.lax.broadcasted_iota(jnp.int32, (tile_b, 1), 0)
    nll = jnp.where(row_ids < true_batch, lse - picked, 0.0)            # (T, 1)
    acc_ref[0, 0] += jnp.sum(nll)

    @pl.when(i == pl.num_programs(0) - 1)
    def _():
        loss_ref[0, 0] = acc_ref[0, 0] / true_batch                     # single SMEM store


def prepare_params(w1, b1, w2, b2, matmul_dtype=jnp.bfloat16):
    """Zero-pad hidden dim to H_PAD and classes to C_PAD, cast weights to the
    MXU operand dtype.  Do this ONCE at module init (hoisted out of forward)."""
    D, H = w1.shape
    H2, C = w2.shape
    assert H2 == H
    w1p = jnp.zeros((D, H_PAD), matmul_dtype).at[:, :H].set(w1.astype(matmul_dtype))
    b1p = jnp.zeros((1, H_PAD), jnp.float32).at[0, :H].set(b1.astype(jnp.float32))
    w2p = jnp.zeros((H_PAD, C_PAD), matmul_dtype).at[:H, :C].set(w2.astype(matmul_dtype))
    # Padded class lanes get a huge negative bias so softmax/logsumexp ignores them.
    b2p = jnp.full((1, C_PAD), NEG_BIG, jnp.float32).at[0, :C].set(b2.astype(jnp.float32))
    return (w1p, b1p, w2p, b2p, C)


def action_basic_forward(x_nchw, params, label=None, tile_b=DEFAULT_TILE_B):
    """Mirrors ActionBasicModule.forward: returns logits, or (logits, loss)."""
    w1p, b1p, w2p, b2p, num_classes = params
    B = x_nchw.shape[0]
    D = w1p.shape[0]
    x_flat = x_nchw.reshape(B, -1)
    assert x_flat.shape[1] == D

    # Tile size: sublane-aligned, at most `tile_b`.  Only pad the batch when it
    # is not already a multiple of the tile (ragged tail handled by the in-kernel
    # row mask; host pad just supplies defined zero rows for those tiles).
    t = min(tile_b, _round_up(B, 8))
    B_pad = _round_up(B, t)
    if B_pad != B:
        x_flat = jnp.zeros((B_pad, D), x_flat.dtype).at[:B].set(x_flat)
    grid = (B_pad // t,)

    x_spec = pl.BlockSpec((t, D), lambda i: (i, 0))
    logits_spec = pl.BlockSpec((t, C_PAD), lambda i: (i, 0))
    # Constant index_map => weights/biases DMA'd once, resident across all steps.
    w1_spec = pl.BlockSpec(w1p.shape, lambda i: (0, 0))
    b1_spec = pl.BlockSpec(b1p.shape, lambda i: (0, 0))
    w2_spec = pl.BlockSpec(w2p.shape, lambda i: (0, 0))
    b2_spec = pl.BlockSpec(b2p.shape, lambda i: (0, 0))
    smem_full = pl.BlockSpec(memory_space=pltpu.MemorySpace.SMEM)

    if label is None:
        # Inference-only kernel: no loss epilogue, no label input, no loss output.
        # Batch axis is independent -> "parallel" (v7x shards tiles over its 2 TCs).
        logits_pad = pl.pallas_call(
            _fwd_kernel,
            grid=grid,
            out_shape=jax.ShapeDtypeStruct((B_pad, C_PAD), jnp.float32),
            in_specs=[x_spec, w1_spec, b1_spec, w2_spec, b2_spec],
            out_specs=logits_spec,
            compiler_params=pltpu.CompilerParams(
                dimension_semantics=("parallel",)),
        )(x_flat, w1p, b1p, w2p, b2p)
        return logits_pad[:B, :num_classes]

    labels2d = label.reshape(B, 1).astype(jnp.int32)
    if B_pad != B:
        labels2d = jnp.zeros((B_pad, 1), jnp.int32).at[:B].set(labels2d)
    labels_spec = pl.BlockSpec((t, 1), lambda i: (i, 0))

    # Loss accumulates across batch tiles -> the grid axis is a reduction: "arbitrary".
    logits_pad, loss = pl.pallas_call(
        functools.partial(_fwd_loss_kernel, true_batch=B),
        grid=grid,
        out_shape=(
            jax.ShapeDtypeStruct((B_pad, C_PAD), jnp.float32),
            jax.ShapeDtypeStruct((1, 1), jnp.float32),
        ),
        in_specs=[x_spec, w1_spec, b1_spec, w2_spec, b2_spec, labels_spec],
        out_specs=(logits_spec, smem_full),
        scratch_shapes=[pltpu.SMEM((1, 1), jnp.float32)],
        compiler_params=pltpu.CompilerParams(
            dimension_semantics=("arbitrary",)),
    )(x_flat, w1p, b1p, w2p, b2p, labels2d)
    return logits_pad[:B, :num_classes], loss[0, 0]


if __name__ == "__main__":
    # Small shapes consistent with the module: NCHW input, classes=7.
    B, Cin, Himg, Wimg = 2, 4, 16, 16
    D = Cin * Himg * Wimg          # 1024
    HID = 32
    CLASSES = 7

    key = jax.random.PRNGKey(0)
    kx, kw1, kw2, kl, kxb, klb = jax.random.split(key, 6)

    x = jax.random.normal(kx, (B, Cin, Himg, Wimg), dtype=jnp.float32)
    w1 = jax.random.normal(kw1, (D, HID), dtype=jnp.float32) * 0.02
    b1 = jnp.zeros((HID,), jnp.float32)
    w2 = jax.random.normal(kw2, (HID, CLASSES), dtype=jnp.float32) * 0.02
    b2 = jnp.zeros((CLASSES,), jnp.float32)
    label = jax.random.randint(kl, (B,), 0, CLASSES)

    def ref_forward(xb, lab=None):
        h = jnp.maximum(xb.reshape(xb.shape[0], -1) @ w1 + b1, 0.0)
        logits = h @ w2 + b2
        if lab is None:
            return logits
        logz = jax.scipy.special.logsumexp(logits, axis=-1)
        loss = jnp.mean(logz - logits[jnp.arange(xb.shape[0]), lab])
        return logits, loss

    # --- f32 MXU-operand params: strict numeric checks. ---
    params_f32 = prepare_params(w1, b1, w2, b2, matmul_dtype=jnp.float32)

    logits, loss = action_basic_forward(x, params_f32, label=label)
    jax.block_until_ready((logits, loss))
    logits_ref, loss_ref = ref_forward(x, label)
    assert jnp.allclose(logits, logits_ref, atol=1e-4, rtol=1e-4)
    assert jnp.allclose(loss, loss_ref, atol=1e-4, rtol=1e-4)

    logits_only = action_basic_forward(x, params_f32, label=None)
    jax.block_until_ready(logits_only)
    assert jnp.allclose(logits_only, logits_ref, atol=1e-4, rtol=1e-4)

    # --- Default bf16 MXU-operand params (all TPU generations). ---
    params_bf16 = prepare_params(w1, b1, w2, b2)
    logits_bf, loss_bf = action_basic_forward(x, params_bf16, label=label)
    jax.block_until_ready((logits_bf, loss_bf))
    assert jnp.allclose(logits_bf, logits_ref, atol=5e-2, rtol=5e-2)
    assert jnp.allclose(loss_bf, loss_ref, atol=5e-2, rtol=5e-2)

    # --- Larger ragged batch: exercises the multi-tile grid, resident weights,
    #     cross-tile loss accumulation and the in-kernel row mask (300 -> 2x256). ---
    B_big = 300
    x_big = jax.random.normal(kxb, (B_big, Cin, Himg, Wimg), dtype=jnp.float32)
    label_big = jax.random.randint(klb, (B_big,), 0, CLASSES)
    logits_big, loss_big = action_basic_forward(x_big, params_f32, label=label_big)
    jax.block_until_ready((logits_big, loss_big))
    logits_big_ref, loss_big_ref = ref_forward(x_big, label_big)
    assert jnp.allclose(logits_big, logits_big_ref, atol=1e-3, rtol=1e-3)
    assert jnp.allclose(loss_big, loss_big_ref, atol=1e-3, rtol=1e-3)

    logits_big_inf = action_basic_forward(x_big, params_f32, label=None)
    jax.block_until_ready(logits_big_inf)
    assert jnp.allclose(logits_big_inf, logits_big_ref, atol=1e-3, rtol=1e-3)

    print("KERNEL_OK")
</pallas_src>

<mosaic_0001>
module attributes {stable_mosaic.version = 11 : i64} {
  func.func @_fwd_loss_kernel(%arg0: i32, %arg1: memref<8x1024xf32, #tpu.memory_space<vmem>>, %arg2: memref<1024x128xf32, #tpu.memory_space<vmem>>, %arg3: memref<1x128xf32, #tpu.memory_space<vmem>>, %arg4: memref<128x128xf32, #tpu.memory_space<vmem>>, %arg5: memref<1x128xf32, #tpu.memory_space<vmem>>, %arg6: memref<8x1xi32, #tpu.memory_space<vmem>>, %arg7: memref<8x128xf32, #tpu.memory_space<vmem>>, %arg8: memref<1x1xf32, #tpu.memory_space<smem>>, %arg9: memref<1x1xf32, #tpu.memory_space<smem>>) attributes {dimension_semantics = [#tpu.dimension_semantics<arbitrary>], iteration_bounds = array<i64: 1>, scalar_prefetch = 0 : i64, scratch_operands = 1 : i64, tpu.core_type = #tpu.core_type<tc>, window_params = [{transform_indices = @transform_0, window_bounds = array<i64: 8, 1024>}, {pipeline_mode = #tpu.pipeline_mode<synchronous>, transform_indices = @transform_1, window_bounds = array<i64: 1024, 128>}, {pipeline_mode = #tpu.pipeline_mode<synchronous>, transform_indices = @transform_2, window_bounds = array<i64: 1, 128>}, {pipeline_mode = #tpu.pipeline_mode<synchronous>, transform_indices = @transform_3, window_bounds = array<i64: 128, 128>}, {pipeline_mode = #tpu.pipeline_mode<synchronous>, transform_indices = @transform_4, window_bounds = array<i64: 1, 128>}, {transform_indices = @transform_5, window_bounds = array<i64: 8, 1>}, {transform_indices = @transform_6, window_bounds = array<i64: 8, 128>}, {transform_indices = @transform_7, window_bounds = array<i64: 1, 1>}]} {
    %c0_i32 = arith.constant 0 : i32
    %0 = arith.cmpi eq, %arg0, %c0_i32 : i32
    %1 = arith.extui %0 : i1 to i32
    %c0_i32_0 = arith.constant 0 : i32
    %2 = arith.cmpi ne, %1, %c0_i32_0 : i32
    scf.if %2 {
      %cst_28 = arith.constant 0.000000e+00 : f32
      %c0_29 = arith.constant 0 : index
      %c0_30 = arith.constant 0 : index
      %53 = memref.load %arg9[%c0_29, %c0_30] : memref<1x1xf32, #tpu.memory_space<smem>>
      memref.store %cst_28, %arg9[%c0_29, %c0_30] : memref<1x1xf32, #tpu.memory_space<smem>>
    } else {
    }
    %c0 = arith.constant 0 : index
    %c0_1 = arith.constant 0 : index
    %3 = vector.load %arg1[%c0, %c0_1] : memref<8x1024xf32, #tpu.memory_space<vmem>>, vector<8x1024xf32>
    %c0_2 = arith.constant 0 : index
    %c0_3 = arith.constant 0 : index
    %4 = vector.load %arg2[%c0_2, %c0_3] : memref<1024x128xf32, #tpu.memory_space<vmem>>, vector<1024x128xf32>
    %cst = arith.constant dense<0.000000e+00> : vector<8x128xf32>
    %5 = tpu.matmul %3, %4, %cst {dimension_numbers = #tpu.dot_dimension_numbers<[1], [0], [0], [1], [0, 0, 1, 1], [], []>} : vector<8x1024xf32>, vector<1024x128xf32>, vector<8x128xf32> -> vector<8x128xf32>
    %c0_4 = arith.constant 0 : index
    %c0_5 = arith.constant 0 : index
    %6 = vector.load %arg3[%c0_4, %c0_5] : memref<1x128xf32, #tpu.memory_space<vmem>>, vector<1x128xf32>
    %7 = vector.broadcast %6 : vector<1x128xf32> to vector<8x128xf32>
    %8 = arith.addf %5, %7 : vector<8x128xf32>
    %cst_6 = arith.constant 0.000000e+00 : f32
    %9 = vector.broadcast %cst_6 : f32 to vector<8x128xf32>
    %10 = arith.maximumf %8, %9 : vector<8x128xf32>
    %c0_7 = arith.constant 0 : index
    %c0_8 = arith.constant 0 : index
    %11 = vector.load %arg4[%c0_7, %c0_8] : memref<128x128xf32, #tpu.memory_space<vmem>>, vector<128x128xf32>
    %cst_9 = arith.constant dense<0.000000e+00> : vector<8x128xf32>
    %12 = tpu.matmul %10, %11, %cst_9 {dimension_numbers = #tpu.dot_dimension_numbers<[1], [0], [0], [1], [0, 0, 1, 1], [], []>} : vector<8x128xf32>, vector<128x128xf32>, vector<8x128xf32> -> vector<8x128xf32>
    %c0_10 = arith.constant 0 : index
    %c0_11 = arith.constant 0 : index
    %13 = vector.load %arg5[%c0_10, %c0_11] : memref<1x128xf32, #tpu.memory_space<vmem>>, vector<1x128xf32>
    %14 = vector.broadcast %13 : vector<1x128xf32> to vector<8x128xf32>
    %15 = arith.addf %12, %14 : vector<8x128xf32>
    %c0_12 = arith.constant 0 : index
    %c0_13 = arith.constant 0 : index
    %16 = vector.load %arg7[%c0_12, %c0_13] : memref<8x128xf32, #tpu.memory_space<vmem>>, vector<8x128xf32>
    tpu.vector_store %arg7[%c0_12, %c0_13], %15 {strides = array<i32>} : memref<8x128xf32, #tpu.memory_space<vmem>>, vector<8x128xf32>,
    %cst_14 = arith.constant dense<0xFF800000> : vector<8xf32>
    %17 = vector.multi_reduction <maximumf>, %15, %cst_14 [1] : vector<8x128xf32> to vector<8xf32>
    %18 = vector.shape_cast %17 : vector<8xf32> to vector<8x1xf32>
    %19 = vector.broadcast %18 : vector<8x1xf32> to vector<8x128xf32>
    %20 = arith.subf %15, %19 : vector<8x128xf32>
    %21 = math.exp %20 : vector<8x128xf32>
    %cst_15 = arith.constant dense<0.000000e+00> : vector<8xf32>
    %22 = vector.multi_reduction <add>, %21, %cst_15 [1] : vector<8x128xf32> to vector<8xf32>
    %23 = vector.shape_cast %22 : vector<8xf32> to vector<8x1xf32>
    %24 = math.log %23 : vector<8x1xf32>
    %25 = arith.addf %18, %24 : vector<8x1xf32>
    %26 = tpu.iota {dimensions = array<i32: 1>} : vector<8x128xi32>
    %c0_16 = arith.constant 0 : index
    %c0_17 = arith.constant 0 : index
    %27 = vector.load %arg6[%c0_16, %c0_17] : memref<8x1xi32, #tpu.memory_space<vmem>>, vector<8x1xi32>
    %28 = vector.broadcast %27 : vector<8x1xi32> to vector<8x128xi32>
    %29 = arith.cmpi eq, %26, %28 : vector<8x128xi32>
    %cst_18 = arith.constant 0.000000e+00 : f32
    %30 = vector.broadcast %cst_18 : f32 to vector<8x128xf32>
    %31 = arith.select %29, %15, %30 : vector<8x128xi1>, vector<8x128xf32>
    %cst_19 = arith.constant dense<0.000000e+00> : vector<8xf32>
    %32 = vector.multi_reduction <add>, %31, %cst_19 [1] : vector<8x128xf32> to vector<8xf32>
    %33 = vector.shape_cast %32 : vector<8xf32> to vector<8x1xf32>
    %c8_i32 = arith.constant 8 : i32
    %34 = arith.muli %arg0, %c8_i32 : i32
    %35 = tpu.iota {dimensions = array<i32: 0>} : vector<8x1xi32>
    %36 = vector.broadcast %34 : i32 to vector<8x1xi32>
    %37 = arith.addi %36, %35 : vector<8x1xi32>
    %c2_i32 = arith.constant 2 : i32
    %38 = vector.broadcast %c2_i32 : i32 to vector<8x1xi32>
    %39 = arith.cmpi slt, %37, %38 : vector<8x1xi32>
    %40 = arith.subf %25, %33 : vector<8x1xf32>
    %cst_20 = arith.constant 0.000000e+00 : f32
    %41 = vector.broadcast %cst_20 : f32 to vector<8x1xf32>
    %42 = arith.select %39, %40, %41 : vector<8x1xi1>, vector<8x1xf32>
    %c0_21 = arith.constant 0 : index
    %c0_22 = arith.constant 0 : index
    %43 = memref.load %arg9[%c0_21, %c0_22] : memref<1x1xf32, #tpu.memory_space<smem>>
    %44 = vector.shape_cast %42 : vector<8x1xf32> to vector<1x8x1xf32>
    %cst_23 = arith.constant dense<0.000000e+00> : vector<1xf32>
    %45 = vector.multi_reduction <add>, %44, %cst_23 [1, 2] : vector<1x8x1xf32> to vector<1xf32>
    %46 = vector.shape_cast %45 : vector<1xf32> to vector<1x1x1xf32>
    %47 = vector.extract %46[0, 0, 0] : f32 from vector<1x1x1xf32>
    %48 = arith.addf %43, %47 : f32
    %c0_24 = arith.constant 0 : index
    %c0_25 = arith.constant 0 : index
    %49 = memref.load %arg9[%c0_24, %c0_25] : memref<1x1xf32, #tpu.memory_space<smem>>
    memref.store %48, %arg9[%c0_24, %c0_25] : memref<1x1xf32, #tpu.memory_space<smem>>
    %c0_i32_26 = arith.constant 0 : i32
    %50 = arith.cmpi eq, %arg0, %c0_i32_26 : i32
    %51 = arith.extui %50 : i1 to i32
    %c0_i32_27 = arith.constant 0 : i32
    %52 = arith.cmpi ne, %51, %c0_i32_27 : i32
    scf.if %52 {
      %c0_28 = arith.constant 0 : index
      %c0_29 = arith.constant 0 : index
      %53 = memref.load %arg9[%c0_28, %c0_29] : memref<1x1xf32, #tpu.memory_space<smem>>
      %cst_30 = arith.constant 2.000000e+00 : f32
      %54 = arith.divf %53, %cst_30 : f32
      %c0_31 = arith.constant 0 : index
      %c0_32 = arith.constant 0 : index
      %55 = memref.load %arg8[%c0_31, %c0_32] : memref<1x1xf32, #tpu.memory_space<smem>>
      memref.store %54, %arg8[%c0_31, %c0_32] : memref<1x1xf32, #tpu.memory_space<smem>>
    } else {
    }
    return
  }
  func.func @transform_0(%arg0: i32) -> (i32, i32) {
    %c0_i32 = arith.constant 0 : i32
    %c0_i32_0 = arith.constant 0 : i32
    return %arg0, %c0_i32 : i32, i32
  }
  func.func @transform_1(%arg0: i32) -> (i32, i32) {
    %c0_i32 = arith.constant 0 : i32
    %c0_i32_0 = arith.constant 0 : i32
    %c0_i32_1 = arith.constant 0 : i32
    return %c0_i32, %c0_i32_0 : i32, i32
  }
  func.func @transform_2(%arg0: i32) -> (i32, i32) {
    %c0_i32 = arith.constant 0 : i32
    %c0_i32_0 = arith.constant 0 : i32
    %c0_i32_1 = arith.constant 0 : i32
    return %c0_i32, %c0_i32_0 : i32, i32
  }
  func.func @transform_3(%arg0: i32) -> (i32, i32) {
    %c0_i32 = arith.constant 0 : i32
    %c0_i32_0 = arith.constant 0 : i32
    %c0_i32_1 = arith.constant 0 : i32
    return %c0_i32, %c0_i32_0 : i32, i32
  }
  func.func @transform_4(%arg0: i32) -> (i32, i32) {
    %c0_i32 = arith.constant 0 : i32
    %c0_i32_0 = arith.constant 0 : i32
    %c0_i32_1 = arith.constant 0 : i32
    return %c0_i32, %c0_i32_0 : i32, i32
  }
  func.func @transform_5(%arg0: i32) -> (i32, i32) {
    %c0_i32 = arith.constant 0 : i32
    %c0_i32_0 = arith.constant 0 : i32
    return %arg0, %c0_i32 : i32, i32
  }
  func.func @transform_6(%arg0: i32) -> (i32, i32) {
    %c0_i32 = arith.constant 0 : i32
    %c0_i32_0 = arith.constant 0 : i32
    return %arg0, %c0_i32 : i32, i32
  }
  func.func @transform_7(%arg0: i32) -> (i32, i32) {
    %c0_i32 = arith.constant 0 : i32
    %c0_i32_0 = arith.constant 0 : i32
    %c0_i32_1 = arith.constant 0 : i32
    return %c0_i32, %c0_i32_0 : i32, i32
  }
}

</mosaic_0001>

<bundles_post_ra>
// kernel: tpu_custom_call.1
= control target key start
LH: loop header
LB: loop body
LE: loop exit
PB: predicated region body
PF: predicated region fallthrough
CT: control target
= control target key end

     0   :  { %13 = vsyncpa [#allocation4], 0  ;;  %s1267_s0 = inlined_call_operand.hbm [shape: f32[8,1024], index: 0, kind: input, shape index: {}]   ;;  %s1268_s1 = inlined_call_operand.hbm [shape: f32[1024,128], index: 1, kind: input, shape index: {}]   ;;  %s1269_s2 = inlined_call_operand.vmem [shape: f32[1,128], index: 2, kind: input, shape index: {}]   ;;  %s1270_s3 = inlined_call_operand.hbm [shape: f32[128,128], index: 3, kind: input, shape index: {}]   ;;  %s1271_s4 = inlined_call_operand.vmem [shape: f32[1,128], index: 4, kind: input, shape index: {}]   ;;  %s1272_s5 = inlined_call_operand.vmem [shape: s32[8,1], index: 5, kind: input, shape index: {}]   ;;  %s1273_s6 = inlined_call_operand.hbm [shape: f32[8,128], index: 6, kind: output, shape index: {0}]   ;;  %s1274_s7 = inlined_call_operand.hbm [shape: f32[1,1], index: 7, kind: output, shape index: {1}]  }
   0x1   :  { %14 = vsyncpa [#allocation8], 0 }
   0x2   :  { %15 = vsyncpa [#allocation5], 0 }
   0x3   :  { %16 = vsyncpa [#allocation6], 0  ;;  %s1141_s24 = smov [#allocation7]   ;;  %s1035_s28 = scalar_lea.hbm %s1268_s1, 16384 }
   0x4   :  { %s32_s25 = sshll.u32 %s1141_s24, 4  ;;  %p1036_p0 = scmp.ne.s32.totalorder %s1268_s1, %s1035_s28  ;;  %s33_s25 = int_to_ptr.vmem [resolvable:$true] %s32_s25 }
   0x5   :  { %p1039_p1 = scmp.lt.u32.totalorder %s1035_s28, %s1268_s1 }
   0x7   :  { %p1041_p2 = pnand %p1039_p1, %p1036_p0 }
   0x9   :  { %1044 = shalt.err (!%p1041_p2)
}
   0xa   :  { %s1045_s10 = scalar_lea.vmem %s33_s25, 16384  ;;  %p1050_p4 = scmp.lt.s32.totalorder %s33_s25, %s33_s25 }
   0xb   :  { %p1046_p3 = scmp.ne.s32.totalorder %s33_s25, %s1045_s10  ;;  %p1051_p5 = scmp.lt.s32.totalorder %s1045_s10, %s1045_s10 }
   0xd   :  { %p1052_p6 = por %p1051_p5, %p1050_p4 }
   0xf   :  { %p1053_p7 = pnand %p1052_p6, %p1046_p3 }
  0x11   :  { %1056 = shalt.err (!%p1053_p7)
}
  0x12   :  { %s1142_s11 = smov 128   ;;  %s1143_s12 = smov 8  }
  0x13   :  { %38 = dma.hbm_to_vmem [thread:$0]  %s1268_s1, 16384, %s33_s25, [#allocation8], %s1142_s11, %s1142_s11, %s1143_s12  }
  0x14   :  { %s1144_s15 = smov [#allocation3]   ;;  %s1145_s17 = smov [#allocation9]  }
  0x15   :  { %s23_s16 = sshll.u32 %s1144_s15, 4  ;;  %s46_s18 = sshll.u32 %s1145_s17, 4  ;;  %s24_s16 = int_to_ptr.vmem [resolvable:$true] %s23_s16  ;;  %s47_s18 = int_to_ptr.vmem [resolvable:$true] %s46_s18 }
  0x16   :  { %s1057_s21 = scalar_lea.hbm %s1267_s0, 1024 }
  0x17   :  { %p1058_p8 = scmp.ne.s32.totalorder %s1267_s0, %s1057_s21  ;;  %p1061_p9 = scmp.lt.u32.totalorder %s1057_s21, %s1267_s0 }
  0x19   :  { %p1063_p10 = pnand %p1061_p9, %p1058_p8 }
  0x1b   :  { %1066 = shalt.err (!%p1063_p10)
}
  0x1c   :  { %s1067_s1 = scalar_lea.vmem %s24_s16, 1024  ;;  %p1072_p12 = scmp.lt.s32.totalorder %s24_s16, %s24_s16 }
  0x1d   :  { %p1068_p11 = scmp.ne.s32.totalorder %s24_s16, %s1067_s1  ;;  %p1073_p13 = scmp.lt.s32.totalorder %s1067_s1, %s1067_s1 }
  0x1f   :  { %p1074_p0 = por %p1073_p13, %p1072_p12 }
  0x21   :  { %p1075_p1 = pnand %p1074_p0, %p1068_p11 }
  0x23   :  { %1078 = shalt.err (!%p1075_p1)
}
  0x24   :  { %26 = dma.hbm_to_vmem [thread:$0]  %s1267_s0, 1024, %s24_s16, [#allocation4]  }
  0x25   :  { %s1079_s30 = scalar_lea.hbm %s1270_s3, 2048 }
  0x26   :  { %p1080_p2 = scmp.ne.s32.totalorder %s1270_s3, %s1079_s30  ;;  %p1083_p3 = scmp.lt.u32.totalorder %s1079_s30, %s1270_s3 }
  0x28   :  { %p1085_p4 = pnand %p1083_p3, %p1080_p2 }
  0x2a   :  { %1088 = shalt.err (!%p1085_p4)
}
  0x2b   :  { %s1089_s14 = scalar_lea.vmem %s47_s18, 2048  ;;  %p1094_p6 = scmp.lt.s32.totalorder %s47_s18, %s47_s18 }
  0x2c   :  { %p1090_p5 = scmp.ne.s32.totalorder %s47_s18, %s1089_s14  ;;  %p1095_p7 = scmp.lt.s32.totalorder %s1089_s14, %s1089_s14 }
  0x2e   :  { %p1096_p8 = por %p1095_p7, %p1094_p6 }
  0x30   :  { %p1097_p9 = pnand %p1096_p8, %p1090_p5 }
  0x32   :  { %1100 = shalt.err (!%p1097_p9)
}
  0x33   :  { %52 = dma.hbm_to_vmem [thread:$0]  %s1270_s3, 2048, %s47_s18, [#allocation8], %s1142_s11, %s1142_s11, %s1143_s12  }
  0x34   :  { %1133 = dma.done.wait [#allocation4], 1024  }
  0x35   :  { %1134 = vsyncadd [#allocation4], 4294966272 }
  0x36   :  { %1135 = dma.done.wait [#allocation8], 18432  }
  0x37   :  { %1136 = vsyncadd [#allocation8], 4294948864  ;;  %v96_v0 = vld [vmem:[#allocation7 + $0x80] sm:$0xff]  ;;  %v97_v1 = vld [vmem:[#allocation7 + $0x88] sm:$0xff]  ;;  %vm1147_vm0 = vmmov 0   ;;  %vm619_vm3 = vcmask 7168  }
  0x38   :  { %v80_v2 = vld [vmem:[#allocation7] sm:$0xff]  ;;  %v865_v3 = vpack.c.bf16 %v97_v1, %v96_v0  ;;  %v81_v4 = vld [vmem:[#allocation7 + $0x8] sm:$0xff]  ;;  %v98_v11 = vld [vmem:[#allocation7 + $0x90] sm:$0xff] }
  0x39   :  { %v128_v5 = vld [vmem:[#allocation7 + $0x180] sm:$0xff]  ;;  %v129_v6 = vld [vmem:[#allocation7 + $0x188] sm:$0xff]  ;;  %v867_v7 = vpack.c.bf16 %v81_v4, %v80_v2  ;;  %v99_v13 = vld [vmem:[#allocation7 + $0x98] sm:$0xff] }
  0x3a   :  { %v897_v8 = vpack.c.bf16 %v129_v6, %v128_v5  ;;  %v112_v9 = vld [vmem:[#allocation7 + $0x100] sm:$0xff]  ;;  %v113_v10 = vld [vmem:[#allocation7 + $0x108] sm:$0xff]  ;;  %866 = vmatprep.subr.bf16.mxu0 %v865_v3  ;;  %v82_v14 = vld [vmem:[#allocation7 + $0x10] sm:$0xff]  ;;  %v869_v16 = vpack.c.bf16 %v99_v13, %v98_v11 }
  0x3b   :  { %v899_v12 = vpack.c.bf16 %v113_v10, %v112_v9  ;;  %v83_v15 = vld [vmem:[#allocation7 + $0x18] sm:$0xff]  ;;  %868 = vmatpush3.bf16.msra.mxu0 %v867_v7  ;;  %v130_v18 = vld [vmem:[#allocation7 + $0x190] sm:$0xff]  ;;  %v100_v23 = vld [vmem:[#allocation7 + $0xa0] sm:$0xff] }
  0x3c   :  { %898 = vmatprep.subr.bf16.mxu1 %v897_v8  ;;  %v871_v17 = vpack.c.bf16 %v83_v15, %v82_v14  ;;  %v131_v19 = vld [vmem:[#allocation7 + $0x198] sm:$0xff]  ;;  %v114_v20 = vld [vmem:[#allocation7 + $0x110] sm:$0xff]  ;;  %v101_v24 = vld [vmem:[#allocation7 + $0xa8] sm:$0xff]  ;;  %870 = vmatprep.subr.bf16.mxu0 %v869_v16 }
  0x3d   :  { %900 = vmatpush3.bf16.msra.mxu1 %v899_v12  ;;  %v901_v21 = vpack.c.bf16 %v131_v19, %v130_v18  ;;  %v115_v22 = vld [vmem:[#allocation7 + $0x118] sm:$0xff]  ;;  %v873_v26 = vpack.c.bf16 %v101_v24, %v100_v23  ;;  %v84_v27 = vld [vmem:[#allocation7 + $0x20] sm:$0xff]  ;;  %v85_v28 = vld [vmem:[#allocation7 + $0x28] sm:$0xff] }
  0x3e   :  { %v903_v25 = vpack.c.bf16 %v115_v22, %v114_v20  ;;  %v132_v29 = vld [vmem:[#allocation7 + $0x1a0] sm:$0xff]  ;;  %v133_v30 = vld [vmem:[#allocation7 + $0x1a8] sm:$0xff]  ;;  %v875_v33 = vpack.c.bf16 %v85_v28, %v84_v27  ;;  %v102_v35 = vld [vmem:[#allocation7 + $0xb0] sm:$0xff] }
  0x3f   :  { %902 = vmatprep.subr.bf16.mxu1 %v901_v21  ;;  %v116_v31 = vld [vmem:[#allocation7 + $0x120] sm:$0xff]  ;;  %v117_v32 = vld [vmem:[#allocation7 + $0x128] sm:$0xff]  ;;  %872 = vmatpush3.bf16.msra.mxu0 %v871_v17  ;;  %v905_v34 = vpack.c.bf16 %v133_v30, %v132_v29  ;;  %v103_v36 = vld [vmem:[#allocation7 + $0xb8] sm:$0xff] }
  0x40   :  { %v86_v37 = vld [vmem:[#allocation7 + $0x30] sm:$0xff]  ;;  %874 = vmatprep.subr.bf16.mxu0 %v873_v26  ;;  %v907_v38 = vpack.c.bf16 %v117_v32, %v116_v31  ;;  %v877_v39 = vpack.c.bf16 %v103_v36, %v102_v35  ;;  %v87_v40 = vld [vmem:[#allocation7 + $0x38] sm:$0xff]  ;;  %v104_v46 = vld [vmem:[#allocation7 + $0xc0] sm:$0xff] }
  0x41   :  { %904 = vmatpush3.bf16.msra.mxu1 %v903_v25  ;;  %v134_v41 = vld [vmem:[#allocation7 + $0x1b0] sm:$0xff]  ;;  %v135_v42 = vld [vmem:[#allocation7 + $0x1b8] sm:$0xff]  ;;  %v105_v47 = vld [vmem:[#allocation7 + $0xc8] sm:$0xff]  ;;  %v879_v48 = vpack.c.bf16 %v87_v40, %v86_v37 }
  0x42   :  { %906 = vmatprep.subr.bf16.mxu1 %v905_v34  ;;  %v909_v43 = vpack.c.bf16 %v135_v42, %v134_v41  ;;  %v118_v44 = vld [vmem:[#allocation7 + $0x130] sm:$0xff]  ;;  %v119_v45 = vld [vmem:[#allocation7 + $0x138] sm:$0xff]  ;;  %v136_v49 = vld [vmem:[#allocation7 + $0x1c0] sm:$0xff]  ;;  %v881_v52 = vpack.c.bf16 %v105_v47, %v104_v46 }
  0x43   :  { %876 = vmatpush3.bf16.msra.mxu0 %v875_v33  ;;  %v137_v50 = vld [vmem:[#allocation7 + $0x1c8] sm:$0xff]  ;;  %v911_v51 = vpack.c.bf16 %v119_v45, %v118_v44  ;;  %v88_v53 = vld [vmem:[#allocation7 + $0x40] sm:$0xff]  ;;  %v106_v58 = vld [vmem:[#allocation7 + $0xd0] sm:$0xff] }
  0x44   :  { %878 = vmatprep.subr.bf16.mxu0 %v877_v39  ;;  %v89_v54 = vld [vmem:[#allocation7 + $0x48] sm:$0xff]  ;;  %v120_v55 = vld [vmem:[#allocation7 + $0x140] sm:$0xff]  ;;  %v913_v56 = vpack.c.bf16 %v137_v50, %v136_v49  ;;  %v107_v59 = vld [vmem:[#allocation7 + $0xd8] sm:$0xff] }
  0x45   :  { %908 = vmatpush3.bf16.msra.mxu1 %v907_v38  ;;  %v121_v57 = vld [vmem:[#allocation7 + $0x148] sm:$0xff]  ;;  %v138_v60 = vld [vmem:[#allocation7 + $0x1d0] sm:$0xff]  ;;  %v139_v61 = vld [vmem:[#allocation7 + $0x1d8] sm:$0xff]  ;;  %v883_v62 = vpack.c.bf16 %v89_v54, %v88_v53  ;;  %v885_v0 = vpack.c.bf16 %v107_v59, %v106_v58 }
  0x46   :  { %910 = vmatprep.subr.bf16.mxu1 %v909_v43  ;;  %v915_v63 = vpack.c.bf16 %v121_v57, %v120_v55  ;;  %v90_v1 = vld [vmem:[#allocation7 + $0x50] sm:$0xff]  ;;  %v91_v2 = vld [vmem:[#allocation7 + $0x58] sm:$0xff]  ;;  %v917_v4 = vpack.c.bf16 %v139_v61, %v138_v60  ;;  %v108_v6 = vld [vmem:[#allocation7 + $0xe0] sm:$0xff] }
  0x47   :  { %880 = vmatpush3.bf16.msra.mxu0 %v879_v48  ;;  %v122_v3 = vld [vmem:[#allocation7 + $0x150] sm:$0xff]  ;;  %v123_v5 = vld [vmem:[#allocation7 + $0x158] sm:$0xff]  ;;  %v109_v7 = vld [vmem:[#allocation7 + $0xe8] sm:$0xff]  ;;  %v887_v10 = vpack.c.bf16 %v91_v2, %v90_v1 }
  0x48   :  { %882 = vmatprep.subr.bf16.mxu0 %v881_v52  ;;  %v140_v8 = vld [vmem:[#allocation7 + $0x1e0] sm:$0xff]  ;;  %v141_v9 = vld [vmem:[#allocation7 + $0x1e8] sm:$0xff]  ;;  %v919_v13 = vpack.c.bf16 %v123_v5, %v122_v3  ;;  %v889_v14 = vpack.c.bf16 %v109_v7, %v108_v6  ;;  %v110_v19 = vld [vmem:[#allocation7 + $0xf0] sm:$0xff] }
  0x49   :  { %912 = vmatpush3.bf16.msra.mxu1 %v911_v51  ;;  %v92_v11 = vld [vmem:[#allocation7 + $0x60] sm:$0xff]  ;;  %v93_v12 = vld [vmem:[#allocation7 + $0x68] sm:$0xff]  ;;  %v921_v18 = vpack.c.bf16 %v141_v9, %v140_v8  ;;  %v111_v20 = vld [vmem:[#allocation7 + $0xf8] sm:$0xff] }
  0x4a   :  { %914 = vmatprep.subr.bf16.mxu1 %v913_v56  ;;  %v124_v15 = vld [vmem:[#allocation7 + $0x160] sm:$0xff]  ;;  %v125_v16 = vld [vmem:[#allocation7 + $0x168] sm:$0xff]  ;;  %v75_v21 = vld [vmem:[#allocation3 + $0x18] sm:$0xff]  ;;  %v891_v24 = vpack.c.bf16 %v93_v12, %v92_v11  ;;  %v893_v26 = vpack.c.bf16 %v111_v20, %v110_v19 }
  0x4b   :  { %884 = vmatpush3.bf16.msra.mxu0 %v883_v62  ;;  %v73_v17 = vld [vmem:[#allocation3 + $0x8] sm:$0xff]  ;;  %v142_v22 = vld [vmem:[#allocation7 + $0x1f0] sm:$0xff]  ;;  %v143_v23 = vld [vmem:[#allocation7 + $0x1f8] sm:$0xff]  ;;  %349 = vmatprep.mubr.f32.mxu1 %v75_v21  ;;  %v923_v25 = vpack.c.bf16 %v125_v16, %v124_v15 }
  0x4c   :  { %886 = vmatprep.subr.bf16.mxu0 %v885_v0  ;;  %279 = vmatprep.mubr.f32.mxu0 %v73_v17  ;;  %v94_v27 = vld [vmem:[#allocation7 + $0x70] sm:$0xff]  ;;  %v95_v28 = vld [vmem:[#allocation7 + $0x78] sm:$0xff]  ;;  %v925_v30 = vpack.c.bf16 %v143_v23, %v142_v22  ;;  %v160_v32 = vld [vmem:[#allocation7 + $0x280] sm:$0xff] }
  0x4d   :  { %916 = vmatpush3.bf16.msra.mxu1 %v915_v63  ;;  %v126_v29 = vld [vmem:[#allocation7 + $0x170] sm:$0xff]  ;;  %v127_v31 = vld [vmem:[#allocation7 + $0x178] sm:$0xff]  ;;  %v161_v33 = vld [vmem:[#allocation7 + $0x288] sm:$0xff]  ;;  %v895_v36 = vpack.c.bf16 %v95_v28, %v94_v27 }
  0x4e   :  { %918 = vmatprep.subr.bf16.mxu1 %v917_v4  ;;  %v192_v34 = vld [vmem:[#allocation7 + $0x380] sm:$0xff]  ;;  %v193_v35 = vld [vmem:[#allocation7 + $0x388] sm:$0xff]  ;;  %v927_v37 = vpack.c.bf16 %v127_v31, %v126_v29  ;;  %v929_v38 = vpack.c.bf16 %v161_v33, %v160_v32  ;;  %v162_v44 = vld [vmem:[#allocation7 + $0x290] sm:$0xff] }
  0x4f   :  { %888 = vmatpush3.bf16.msra.mxu0 %v887_v10  ;;  %v144_v39 = vld [vmem:[#allocation7 + $0x200] sm:$0xff]  ;;  %v145_v40 = vld [vmem:[#allocation7 + $0x208] sm:$0xff]  ;;  %v961_v42 = vpack.c.bf16 %v193_v35, %v192_v34  ;;  %v163_v45 = vld [vmem:[#allocation7 + $0x298] sm:$0xff] }
  0x50   :  { %890 = vmatprep.subr.bf16.mxu0 %v889_v14  ;;  %v176_v41 = vld [vmem:[#allocation7 + $0x300] sm:$0xff]  ;;  %v177_v43 = vld [vmem:[#allocation7 + $0x308] sm:$0xff]  ;;  %v194_v46 = vld [vmem:[#allocation7 + $0x390] sm:$0xff]  ;;  %v931_v49 = vpack.c.bf16 %v145_v40, %v144_v39  ;;  %v933_v52 = vpack.c.bf16 %v163_v45, %v162_v44 }
  0x51   :  { %920 = vmatpush3.bf16.msra.mxu1 %v919_v13  ;;  %v195_v47 = vld [vmem:[#allocation7 + $0x398] sm:$0xff]  ;;  %v72_v48 = vld [vmem:[#allocation3] sm:$0xff]  ;;  %v74_v50 = vld [vmem:[#allocation3 + $0x10] sm:$0xff]  ;;  %v963_v51 = vpack.c.bf16 %v177_v43, %v176_v41 }
  0x52   :  { %922 = vmatprep.subr.bf16.mxu1 %v921_v18  ;;  %v146_v53 = vld [vmem:[#allocation7 + $0x210] sm:$0xff]  ;;  %v147_v54 = vld [vmem:[#allocation7 + $0x218] sm:$0xff]  ;;  %v965_v56 = vpack.c.bf16 %v195_v47, %v194_v46  ;;  %v164_v58 = vld [vmem:[#allocation7 + $0x2a0] sm:$0xff] }
  0x53   :  { %892 = vmatpush3.bf16.msra.mxu0 %v891_v24  ;;  %v178_v55 = vld [vmem:[#allocation7 + $0x310] sm:$0xff]  ;;  %v179_v57 = vld [vmem:[#allocation7 + $0x318] sm:$0xff]  ;;  %v165_v59 = vld [vmem:[#allocation7 + $0x2a8] sm:$0xff]  ;;  %v935_v62 = vpack.c.bf16 %v147_v54, %v146_v53 }
  0x54   :  { %894 = vmatprep.subr.bf16.mxu0 %v893_v26  ;;  %v196_v60 = vld [vmem:[#allocation7 + $0x3a0] sm:$0xff]  ;;  %v197_v61 = vld [vmem:[#allocation7 + $0x3a8] sm:$0xff]  ;;  %v967_v63 = vpack.c.bf16 %v179_v57, %v178_v55  ;;  %v937_v0 = vpack.c.bf16 %v165_v59, %v164_v58  ;;  %v166_v6 = vld [vmem:[#allocation7 + $0x2b0] sm:$0xff] }
  0x55   :  { %924 = vmatpush3.bf16.msra.mxu1 %v923_v25  ;;  %v148_v1 = vld [vmem:[#allocation7 + $0x220] sm:$0xff]  ;;  %v149_v2 = vld [vmem:[#allocation7 + $0x228] sm:$0xff]  ;;  %v969_v4 = vpack.c.bf16 %v197_v61, %v196_v60  ;;  %v167_v7 = vld [vmem:[#allocation7 + $0x2b8] sm:$0xff] }
  0x56   :  { %926 = vmatprep.subr.bf16.mxu1 %v925_v30  ;;  %v180_v3 = vld [vmem:[#allocation7 + $0x320] sm:$0xff]  ;;  %v181_v5 = vld [vmem:[#allocation7 + $0x328] sm:$0xff]  ;;  %v198_v8 = vld [vmem:[#allocation7 + $0x3b0] sm:$0xff]  ;;  %v939_v10 = vpack.c.bf16 %v149_v2, %v148_v1  ;;  %v941_v12 = vpack.c.bf16 %v167_v7, %v166_v6 }
  0x57   :  { %896 = vmatpush3.bf16.msra.mxu0 %v895_v36  ;;  %v199_v9 = vld [vmem:[#allocation7 + $0x3b8] sm:$0xff]  ;;  %v971_v11 = vpack.c.bf16 %v181_v5, %v180_v3  ;;  %v150_v13 = vld [vmem:[#allocation7 + $0x230] sm:$0xff]  ;;  %v168_v18 = vld [vmem:[#allocation7 + $0x2c0] sm:$0xff] }
  0x58   :  { %930 = vmatprep.subr.bf16.mxu0 %v929_v38  ;;  %v151_v14 = vld [vmem:[#allocation7 + $0x238] sm:$0xff]  ;;  %v182_v15 = vld [vmem:[#allocation7 + $0x330] sm:$0xff]  ;;  %v973_v16 = vpack.c.bf16 %v199_v9, %v198_v8  ;;  %v169_v19 = vld [vmem:[#allocation7 + $0x2c8] sm:$0xff] }
  0x59   :  { %928 = vmatpush3.bf16.msra.mxu1 %v927_v37  ;;  %v183_v17 = vld [vmem:[#allocation7 + $0x338] sm:$0xff]  ;;  %v200_v20 = vld [vmem:[#allocation7 + $0x3c0] sm:$0xff]  ;;  %v201_v21 = vld [vmem:[#allocation7 + $0x3c8] sm:$0xff]  ;;  %v943_v22 = vpack.c.bf16 %v151_v14, %v150_v13  ;;  %v945_v26 = vpack.c.bf16 %v169_v19, %v168_v18 }
  0x5a   :  { %962 = vmatprep.subr.bf16.mxu1 %v961_v42  ;;  %280 = vmatmul.mubr.f32.vlgmr.msra.gmra.mrb[0].mxu0 %v72_v48  ;;  %v77_v23 = vld [vmem:[#allocation3 + $0x28] sm:$0xff]  ;;  %v79_v24 = vld [vmem:[#allocation3 + $0x38] sm:$0xff]  ;;  %v975_v25 = vpack.c.bf16 %v183_v17, %v182_v15  ;;  %v152_v27 = vld [vmem:[#allocation7 + $0x240] sm:$0xff]  ;;  %v977_v30 = vpack.c.bf16 %v201_v21, %v200_v20 }
  0x5b   :  { %932 = vmatpush3.bf16.msra.mxu0 %v931_v49  ;;  %v153_v28 = vld [vmem:[#allocation7 + $0x248] sm:$0xff]  ;;  %v184_v29 = vld [vmem:[#allocation7 + $0x340] sm:$0xff]  ;;  %v170_v32 = vld [vmem:[#allocation7 + $0x2d0] sm:$0xff]  ;;  %419 = vmatprep.mubr.f32.mxu0 %v77_v23 }
  0x5c   :  { %350 = vmatmul.mubr.f32.vlgmr.msra.gmra.mrb[0].mxu1 %v74_v50  ;;  %934 = vmatprep.subr.bf16.mxu0 %v933_v52  ;;  %v185_v31 = vld [vmem:[#allocation7 + $0x348] sm:$0xff]  ;;  %v171_v33 = vld [vmem:[#allocation7 + $0x2d8] sm:$0xff]  ;;  %v202_v34 = vld [vmem:[#allocation7 + $0x3d0] sm:$0xff]  ;;  %v947_v36 = vpack.c.bf16 %v153_v28, %v152_v27 }
  0x5d   :  { %964 = vmatpush3.bf16.msra.mxu1 %v963_v51  ;;  %v203_v35 = vld [vmem:[#allocation7 + $0x3d8] sm:$0xff]  ;;  %489 = vmatprep.mubr.f32.mxu1 %v79_v24  ;;  %v979_v37 = vpack.c.bf16 %v185_v31, %v184_v29  ;;  %v949_v38 = vpack.c.bf16 %v171_v33, %v170_v32  ;;  %v154_v39 = vld [vmem:[#allocation7 + $0x250] sm:$0xff]  ;;  %v172_v44 = vld [vmem:[#allocation7 + $0x2e0] sm:$0xff]  ;;  %v1148_v33 = vmov 0.0  }
  0x5e   :  { %966 = vmatprep.subr.bf16.mxu1 %v965_v56  ;;  %v155_v40 = vld [vmem:[#allocation7 + $0x258] sm:$0xff]  ;;  %v186_v41 = vld [vmem:[#allocation7 + $0x350] sm:$0xff]  ;;  %v981_v42 = vpack.c.bf16 %v203_v35, %v202_v34  ;;  %v173_v45 = vld [vmem:[#allocation7 + $0x2e8] sm:$0xff] }
  0x5f   :  { %936 = vmatpush3.bf16.msra.mxu0 %v935_v62  ;;  %v187_v43 = vld [vmem:[#allocation7 + $0x358] sm:$0xff]  ;;  %v204_v46 = vld [vmem:[#allocation7 + $0x3e0] sm:$0xff]  ;;  %v205_v47 = vld [vmem:[#allocation7 + $0x3e8] sm:$0xff]  ;;  %v951_v48 = vpack.c.bf16 %v155_v40, %v154_v39  ;;  %v953_v50 = vpack.c.bf16 %v173_v45, %v172_v44 }
  0x60   :  { %938 = vmatprep.subr.bf16.mxu0 %v937_v0  ;;  %v983_v49 = vpack.c.bf16 %v187_v43, %v186_v41  ;;  %v156_v51 = vld [vmem:[#allocation7 + $0x260] sm:$0xff]  ;;  %v157_v52 = vld [vmem:[#allocation7 + $0x268] sm:$0xff]  ;;  %v985_v54 = vpack.c.bf16 %v205_v47, %v204_v46  ;;  %v174_v56 = vld [vmem:[#allocation7 + $0x2f0] sm:$0xff] }
  0x61   :  { %968 = vmatpush3.bf16.msra.mxu1 %v967_v63  ;;  %v188_v53 = vld [vmem:[#allocation7 + $0x360] sm:$0xff]  ;;  %v189_v55 = vld [vmem:[#allocation7 + $0x368] sm:$0xff]  ;;  %v175_v57 = vld [vmem:[#allocation7 + $0x2f8] sm:$0xff]  ;;  %v955_v60 = vpack.c.bf16 %v157_v52, %v156_v51  ;;  %v1149_v52 = vmov 0  }
  0x62   :  { %970 = vmatprep.subr.bf16.mxu1 %v969_v4  ;;  %v206_v58 = vld [vmem:[#allocation7 + $0x3f0] sm:$0xff]  ;;  %v207_v59 = vld [vmem:[#allocation7 + $0x3f8] sm:$0xff]  ;;  %v987_v61 = vpack.c.bf16 %v189_v55, %v188_v53  ;;  %v957_v62 = vpack.c.bf16 %v175_v57, %v174_v56  ;;  %v76_v6 = vld [vmem:[#allocation3 + $0x20] sm:$0xff]  ;;  %1030 = vset.pattern.permute.xlu0 %v1149_v52 }
  0x63   :  { %940 = vmatpush3.bf16.msra.mxu0 %v939_v10  ;;  %v158_v63 = vld [vmem:[#allocation7 + $0x270] sm:$0xff]  ;;  %v159_v0 = vld [vmem:[#allocation7 + $0x278] sm:$0xff]  ;;  %v989_v1 = vpack.c.bf16 %v207_v59, %v206_v58  ;;  %v496_v8 = vld [vmem:[#allocation9] sm:$0xff] }
  0x64   :  { %942 = vmatprep.subr.bf16.mxu0 %v941_v12  ;;  %v190_v2 = vld [vmem:[#allocation7 + $0x370] sm:$0xff]  ;;  %v191_v3 = vld [vmem:[#allocation7 + $0x378] sm:$0xff]  ;;  %v959_v4 = vpack.c.bf16 %v159_v0, %v158_v63  ;;  %v497_v9 = vld [vmem:[#allocation9 + $0x8] sm:$0xff] }
  0x65   :  { %972 = vmatpush3.bf16.msra.mxu1 %v971_v11  ;;  %v991_v5 = vpack.c.bf16 %v191_v3, %v190_v2  ;;  %v78_v7 = vld [vmem:[#allocation3 + $0x30] sm:$0xff]  ;;  %v1146_v11 = vmov 0.0|0.0   ;;  %v994_v12 = vpack.c.bf16 %v497_v9, %v496_v8  ;;  %v499_v13 = vld [vmem:[#allocation9 + $0x18] sm:$0xff]  ;;  %v500_v15 = vld [vmem:[#allocation9 + $0x20] sm:$0xff] }
  0x66   :  { %974 = vmatprep.subr.bf16.mxu1 %v973_v16  ;;  %v498_v10 = vld [vmem:[#allocation9 + $0x10] sm:$0xff]  ;;  %v501_v16 = vld [vmem:[#allocation9 + $0x28] sm:$0xff]  ;;  %v503_v19 = vld [vmem:[#allocation9 + $0x38] sm:$0xff] }
  0x67   :  { %944 = vmatpush3.bf16.msra.mxu0 %v943_v22  ;;  %v997_v14 = vpack.c.bf16 %v499_v13, %v498_v10  ;;  %v1000_v17 = vpack.c.bf16 %v501_v16, %v500_v15  ;;  %v502_v18 = vld [vmem:[#allocation9 + $0x30] sm:$0xff]  ;;  %v504_v21 = vld [vmem:[#allocation9 + $0x40] sm:$0xff]  ;;  %v505_v22 = vld [vmem:[#allocation9 + $0x48] sm:$0xff] }
  0x68   :  { %946 = vmatprep.subr.bf16.mxu0 %v945_v26  ;;  %v1003_v20 = vpack.c.bf16 %v503_v19, %v502_v18  ;;  %v1006_v23 = vpack.c.bf16 %v505_v22, %v504_v21  ;;  %v506_v24 = vld [vmem:[#allocation9 + $0x50] sm:$0xff]  ;;  %v508_v27 = vld [vmem:[#allocation9 + $0x60] sm:$0xff]  ;;  %v509_v28 = vld [vmem:[#allocation9 + $0x68] sm:$0xff] }
  0x69   :  { %976 = vmatpush3.bf16.msra.mxu1 %v975_v25  ;;  %v507_v25 = vld [vmem:[#allocation9 + $0x58] sm:$0xff]  ;;  %v1012_v29 = vpack.c.bf16 %v509_v28, %v508_v27  ;;  %v671_v35 = vld [vmem:[%s1269_s2] ss:$0 sm:$0xff] }
  0x6a   :  { %978 = vmatprep.subr.bf16.mxu1 %v977_v30  ;;  %v1009_v26 = vpack.c.bf16 %v507_v25, %v506_v24  ;;  %v510_v30 = vld [vmem:[#allocation9 + $0x70] sm:$0xff]  ;;  %v511_v31 = vld [vmem:[#allocation9 + $0x78] sm:$0xff]  ;;  %v672_v53 = vld [vmem:[%s1271_s4] ss:$0 sm:$0xff]  ;;  %s1150_s4 = smov [#allocation10]  }
  0x6b   :  { %948 = vmatpush3.bf16.msra.mxu0 %v947_v36  ;;  %v1015_v32 = vpack.c.bf16 %v511_v31, %v510_v30  ;;  %v602_v57 = vld [vmem:[%s1272_s5] sm:$0xff]  ;;  %s648_s5 = sshll.u32 %s1150_s4, 4  ;;  %s649_s5 = int_to_ptr.vmem [resolvable:$true] %s648_s5 }
  0x6c   :  { %950 = vmatprep.subr.bf16.mxu0 %v949_v38  ;;  %s1101_s18 = scalar_lea.vmem %s649_s5, 128  ;;  %p1106_p11 = scmp.lt.s32.totalorder %s649_s5, %s649_s5 }
  0x6d   :  { %980 = vmatpush3.bf16.msra.mxu1 %v979_v37  ;;  %p1102_p10 = scmp.ne.s32.totalorder %s649_s5, %s1101_s18  ;;  %p1107_p12 = scmp.lt.s32.totalorder %s1101_s18, %s1101_s18 }
  0x6e   :  { %982 = vmatprep.subr.bf16.mxu1 %v981_v42 }
  0x6f   :  { %952 = vmatpush3.bf16.msra.mxu0 %v951_v48  ;;  %p1108_p13 = por %p1107_p12, %p1106_p11 }
  0x70   :  { %954 = vmatprep.subr.bf16.mxu0 %v953_v50 }
  0x71   :  { %984 = vmatpush3.bf16.msra.mxu1 %v983_v49  ;;  %p1109_p0 = pnand %p1108_p13, %p1102_p10 }
  0x72   :  { %986 = vmatprep.subr.bf16.mxu1 %v985_v54 }
  0x73   :  { %956 = vmatpush3.bf16.msra.mxu0 %v955_v60 }
  0x74   :  { %958 = vmatprep.subr.bf16.mxu0 %v957_v62 }
  0x75   :  { %988 = vmatpush3.bf16.msra.mxu1 %v987_v61  ;;  %v600_v61 = vlaneseq }
  0x76   :  { %990 = vmatprep.subr.bf16.mxu1 %v989_v1 }
  0x77   :  { %960 = vmatpush3.bf16.msra.mxu0 %v959_v4  ;;  %v601_v62 = vand.u32 127, %v600_v61  ;;  %v612_v4 = vshrl.u32 %v600_v61, 7 }
  0x78   :  { %993 = vmatprep.subr.bf16.mxu0 %v1146_v11 }
  0x79   :  { %992 = vmatpush3.bf16.msra.mxu1 %v991_v5  ;;  %vm615_vm2 = vcmp.lt.s32.totalorder %v612_v4, 2 }
  0x7a   :  { %420 = vmatmul.mubr.f32.vlgmr.msra.gmra.mrb[2].mxu0 %v76_v6 }
  0x7b   :  { %995 = vmatpush3.bf16.msra.mxu0 %v994_v12  ;;  %862 = vmatprep.mubr.msk.f32.mxu0 %vm1147_vm0, %v1148_v33 }
  0x7c   :  { %490 = vmatmul.mubr.f32.vlgmr.msra.gmra.mrb[2].mxu1 %v78_v7  ;;  %996 = vmatprep.subr.bf16.mxu0 %v1146_v11 }
  0x7f   :  { %998 = vmatpush3.bf16.msra.mxu0 %v997_v14 }
  0x80   :  { %999 = vmatprep.subr.bf16.mxu0 %v1146_v11 }
  0x83   :  { %1001 = vmatpush3.bf16.msra.mxu0 %v1000_v17 }
  0x84   :  { %1002 = vmatprep.subr.bf16.mxu0 %v1146_v11 }
  0x87   :  { %1004 = vmatpush3.bf16.msra.mxu0 %v1003_v20 }
  0x88   :  { %1005 = vmatprep.subr.bf16.mxu0 %v1146_v11 }
  0x8b   :  { %1007 = vmatpush3.bf16.msra.mxu0 %v1006_v23 }
  0x8c   :  { %1008 = vmatprep.subr.bf16.mxu0 %v1146_v11 }
  0x8f   :  { %1010 = vmatpush3.bf16.msra.mxu0 %v1009_v26 }
  0x90   :  { %1011 = vmatprep.subr.bf16.mxu0 %v1146_v11 }
  0x93   :  { %1013 = vmatpush3.bf16.msra.mxu0 %v1012_v29 }
  0x94   :  { %1014 = vmatprep.subr.bf16.mxu0 %v1146_v11 }
  0x97   :  { %1016 = vmatpush3.bf16.msra.mxu0 %v1015_v32 }
 0x12d   :  { %v705_v34 = vpop.f32.mrb[0].mxu0 }
 0x12e   :  { %v706_v36 = vpop.f32.mrb[1].mxu0 }
 0x12f   :  { %v740_v37 = vpop.f32.mrb[0].mxu1  ;;  %v707_v38 = vadd.f32 %v706_v36, %v705_v34 }
 0x130   :  { %v741_v39 = vpop.f32.mrb[1].mxu1 }
 0x131   :  { %v742_v40 = vadd.f32 %v741_v39, %v740_v37  ;;  %v282_v41 = vadd.f32 %v707_v38, %v671_v35 }
 0x133   :  { %v352_v42 = vadd.f32 %v742_v40, %v282_v41 }
 0x14d   :  { %v775_v43 = vpop.f32.mrb[2].mxu0 }
 0x14e   :  { %v776_v44 = vpop.f32.mrb[3].mxu0 }
 0x14f   :  { %v810_v45 = vpop.f32.mrb[2].mxu1  ;;  %v777_v46 = vadd.f32 %v776_v44, %v775_v43 }
 0x150   :  { %v811_v47 = vpop.f32.mrb[3].mxu1 }
 0x151   :  { %v812_v48 = vadd.f32 %v811_v47, %v810_v45  ;;  %v422_v49 = vadd.f32 %v777_v46, %v352_v42 }
 0x153   :  { %v492_v50 = vadd.f32 %v812_v48, %v422_v49 }
 0x155   :  { %v495_v51 = vmax.f32 %v492_v50, 0.0 }
 0x157   :  { %863 = vmatmul.mubr.f32.vlgmr.msra.gmra.mrb[4].mxu0 %v495_v51 }
 0x22a   :  { %v585_v54 = vpop.f32.mrb[4].mxu0 }
 0x22b   :  { %v586_v55 = vadd.f32 %v672_v53, %v585_v54  ;;  %v864_v56 = vpop.f32.mrb[5].mxu0 }
 0x22d   :  { %589 = vst [vmem:[#allocation10] sm:$0xff] %v586_v55  ;;  %590 = vmax.xlane.f32.xlu0 %v586_v55 }
 0x243   :  { %604 = vperm.xlu0 %1030, %v602_v57  }
 0x2ba   :  { %v591_v58 = vpop.xlane.xlu0 %590 }
 0x2bb   :  { %v592_v59 = vsub.f32 %v586_v55, %v591_v58 }
 0x2bd   :  { %v593_v60 = vmul.f32 1.442695, %v592_v59 }
 0x2bf   :  { %1031 = vpow2.f32 %v593_v60 }
 0x2c2   :  { %v605_v63 = vpop.permute.xlu0 %604 }
 0x2c3   :  { %vm606_vm1 = vcmp.eq.s32.totalorder %v601_v62, %v605_v63 }
 0x2c4   :  { %v607_v1 = vsel %vm606_vm1, %v586_v55, 0.0 }
 0x2c9   :  { %v1032_v0 = vpop.eup %1031 }
 0x2ca   :  { %595 = vadd.xlane.f32.xlu1 %v1032_v0 }
 0x2ce   :  { %608 = vadd.xlane.f32.xlu1 %v607_v1 }
 0x357   :  { %v596_v2 = vpop.xlane.xlu1 %595 }
 0x358   :  { %1033 = vlog2.f32 %v596_v2 }
 0x35b   :  { %v609_v7 = vpop.xlane.xlu1 %608 }
 0x362   :  { %v1034_v3 = vpop.eup %1033 }
 0x363   :  { %v598_v5 = vmul.f32 0.6931472, %v1034_v3 }
 0x365   :  { %v599_v6 = vadd.f32 %v598_v5, %v591_v58 }
 0x367   :  { %v616_v8 = vsub.f32 %v599_v6, %v609_v7 }
 0x369   :  { %v617_v9 = vsel %vm615_vm2, %v616_v8, 0.0 }
 0x36a   :  { %v620_v10 = vsel %vm619_vm3, %v617_v9, 0.0 }
 0x36b   :  { %621 = vadd.xlane.f32.xlu1 %v620_v10 }
 0x36c   :  { %1112 = shalt.err (!%p1109_p0)
}
 0x36d   :  { %s1113_s21 = scalar_lea.hbm %s1273_s6, 128 }
 0x36e   :  { %p1114_p1 = scmp.ne.s32.totalorder %s1273_s6, %s1113_s21  ;;  %p1117_p2 = scmp.lt.u32.totalorder %s1113_s21, %s1273_s6 }
 0x370   :  { %p1119_p3 = pnand %p1117_p2, %p1114_p1 }
 0x372   :  { %1122 = shalt.err (!%p1119_p3)
}
 0x373   :  { %651 = dma.vmem_to_hbm [thread:$0]  %s649_s5, 128, %s1273_s6, [#allocation5]  }
 0x374   :  { %s1123_s8 = scalar_lea.hbm %s1274_s7, 16 }
 0x375   :  { %p1124_p4 = scmp.ne.s32.totalorder %s1274_s7, %s1123_s8  ;;  %p1127_p5 = scmp.lt.u32.totalorder %s1123_s8, %s1274_s7 }
 0x377   :  { %p1129_p6 = pnand %p1127_p5, %p1124_p4 }
 0x3f8   :  { %v622_v11 = vpop.xlane.xlu1 %621 }
 0x3f9   :  { %v623_v12 = vrot.slane %v622_v11, 4 }
 0x3fb   :  { %v624_v13 = vadd.f32 %v623_v12, %v622_v11 }
 0x3fd   :  { %v625_v14 = vrot.slane %v624_v13, 2 }
 0x3ff   :  { %v626_v15 = vadd.f32 %v625_v14, %v624_v13 }
 0x401   :  { %v627_v16 = vrot.slane %v626_v15, 1 }
 0x403   :  { %v628_v17 = vadd.f32 %v627_v16, %v626_v15 }
 0x405   :  { %1017 = vpush %v628_v17 }
 0x436   :  { %s1018_s27 = spop %1017 }
 0x437   :  { %s639_s28 = smul.f32 0.5, %s1018_s27 }
 0x439   :  { %641 = sst [smem:[#allocation11]] %s639_s28 }
 0x43a   :  { %1132 = shalt.err (!%p1129_p6)
}
 0x43b   :  { %s1151_s14 = smov [#allocation11]  }
 0x43c   :  { %659 = dma.smem_to_hbm %s1151_s14, 16, %s1274_s7, [#allocation6]  }
 0x43d   :  { %1137 = dma.done.wait [#allocation5], 128  }
 0x43e   :  { %1138 = vsyncadd [#allocation5], 4294967168 }
 0x43f   :  { %1139 = dma.done.wait [#allocation6], 16  }
 0x440   :  { %1140 = vsyncadd [#allocation6], 4294967280 }
 0x441   :  { %666 = sfence }
 0x442   :  { %667 = vsyncpa [#allocation4], 1 }
 0x443   :  { %668 = vsyncpa [#allocation8], 1 }
 0x444   :  { %669 = vsyncpa [#allocation5], 1 }
 0x445   :  { %670 = vsyncpa [#allocation6], 1 }

</bundles_post_ra>
